<compile_context>
chip_gen: v7x
topology: tpu7x:2x2x1
jax: 0.10.0
libtpu: 0.0.40
codegen_flags: <defaults>
</compile_context>

<pallas_src>
import functools

import jax
import jax.numpy as jnp
from jax.experimental import pallas as pl
from jax.experimental.pallas import tpu as pltpu

# ----------------------- model hyper-parameters ----------------------------
TEXT_DIM = 32
AUDIO_DIM = 32
HEADS = 4
DIM_HEAD = 32
INNER = HEADS * DIM_HEAD            # 128
SCALE = DIM_HEAD ** (-0.5)

B = 2
N_TEXT = 8
N_AUDIO = 8


# ------------------------------ kernel -------------------------------------
def _bi_xattn_kernel(text_ref, audio_ref, wqk_ref, wv_ref, wo_ref, bo_ref,
                     out_ref, qk_scr, v_scr, o_scr,
                     *, batch, n_text, n_audio, heads, dim_head, scale):
    f32 = jnp.float32
    bf16 = jnp.bfloat16
    d = dim_head

    # Whole-block bf16 casts (MXU operands); accumulation stays f32 everywhere.
    audio = audio_ref[...].astype(bf16)            # (B*N_a, audio_dim)
    text = text_ref[...].astype(bf16)              # (B*N_t, text_dim)
    wqk = wqk_ref[...].astype(bf16)                # (audio_dim, H*d)   N = 128
    wv = wv_ref[...].astype(bf16)                  # (text_dim,  H*d)   N = 128
    wo = wo_ref[...].astype(bf16)                  # (H*d, audio_dim)   K = 128

    # Fused projections: two lane-dense matmuls instead of 2*H tiny ones.
    qk = jnp.dot(audio, wqk, preferred_element_type=f32)      # (B*N_a, H*d) f32
    v = jnp.dot(text, wv, preferred_element_type=f32)         # (B*N_t, H*d) f32
    qk_scr[...] = qk.astype(bf16)                              # single whole-block casts;
    v_scr[...] = v.astype(bf16)                                # heads stay in the lane dim

    # Per-head similarity logits, batched over B (one 3-D dot_general per head).
    sims = []
    v_heads = []
    for h in range(heads):
        qk_h = qk_scr[:, h * d:(h + 1) * d].reshape(batch, n_audio, d)   # (B, N_a, d)
        v_h = v_scr[:, h * d:(h + 1) * d].reshape(batch, n_text, d)      # (B, N_t, d)
        v_heads.append(v_h)
        sims.append(jnp.einsum('bid,bjd->bij', qk_h, v_h,
                               preferred_element_type=f32))              # (B, N_a, N_t)

    # One numerically-stable softmax over all heads (f32 math, EUP reciprocal).
    sim = jnp.concatenate(sims, axis=0) * scale                # (H*B, N_a, N_t)
    sim = sim - jnp.max(sim, axis=-1, keepdims=True)
    p = jnp.exp(sim)
    attn = (p * pl.reciprocal(jnp.sum(p, axis=-1, keepdims=True), approx=True)
            ).astype(bf16)                                     # one whole-block cast

    # attn @ v per head (B-batched), assembled head-along-lanes into one
    # (B*N_a, H*d) tile so the output projection is a single K=128 matmul.
    for h in range(heads):
        attn_h = attn[h * batch:(h + 1) * batch]               # (B, N_a, N_t)
        o_h = jnp.einsum('bij,bjd->bid', attn_h, v_heads[h],
                         preferred_element_type=f32)           # (B, N_a, d)
        o_scr[:, h * d:(h + 1) * d] = o_h.reshape(batch * n_audio, d)

    # Fused output projection + bias; single contiguous store.
    o_full = o_scr[...].astype(bf16)                           # (B*N_a, H*d)
    out = jnp.dot(o_full, wo, preferred_element_type=f32)      # (B*N_a, audio_dim)
    out_ref[...] = (out + bo_ref[...]).astype(out_ref.dtype)


# ------------------------------ wrapper ------------------------------------
@jax.jit
def bidirectional_cross_attention(text, audio, w_qk_t, w_v_t, w_o_t, b_o):
    """text: (B, N_t, text_dim); audio: (B, N_a, audio_dim).

    w_qk_t: (audio_dim, heads*dim_head), w_v_t: (text_dim, heads*dim_head),
    w_o_t : (heads*dim_head, audio_dim), b_o: (1, audio_dim) — all f32, (in, out) layout.
    Returns (B, N_a, audio_dim). No per-call weight prep: scaling / casting happens
    inside the kernel.
    """
    b, n_a, a_dim = audio.shape
    _, n_t, t_dim = text.shape
    inner = HEADS * DIM_HEAD

    # Fold batch into the matmul M-dim (free row-major reshapes under jit).
    audio_flat = audio.reshape(b * n_a, a_dim)
    text_flat = text.reshape(b * n_t, t_dim)

    kernel = functools.partial(
        _bi_xattn_kernel, batch=b, n_text=n_t, n_audio=n_a,
        heads=HEADS, dim_head=DIM_HEAD, scale=SCALE)

    vmem = pltpu.MemorySpace.VMEM
    out_flat = pl.pallas_call(
        kernel,
        out_shape=jax.ShapeDtypeStruct((b * n_a, a_dim), audio.dtype),
        # No grid: single invocation, whole operands resident in VMEM
        # (removes the ~0.35 us single-step pipeline overhead).
        in_specs=[
            pl.BlockSpec(memory_space=vmem),   # text  (flat)
            pl.BlockSpec(memory_space=vmem),   # audio (flat)
            pl.BlockSpec(memory_space=vmem),   # W_qk (audio_dim, H*d)
            pl.BlockSpec(memory_space=vmem),   # W_v  (text_dim,  H*d)
            pl.BlockSpec(memory_space=vmem),   # W_out (H*d, audio_dim)
            pl.BlockSpec(memory_space=vmem),   # b_out (1, audio_dim)
        ],
        out_specs=pl.BlockSpec(memory_space=vmem),
        scratch_shapes=[
            pltpu.VMEM((b * n_a, inner), jnp.bfloat16),   # qk (heads in lanes)
            pltpu.VMEM((b * n_t, inner), jnp.bfloat16),   # v  (heads in lanes)
            pltpu.VMEM((b * n_a, inner), jnp.float32),    # o assembly (heads in lanes)
        ],
        # NOTE(v7x): if B*N ever grows, add a 'parallel' batch grid axis so the
        # second TensorCore gets work; at these sizes a single invocation is right.
    )(text_flat, audio_flat, w_qk_t, w_v_t, w_o_t, b_o)

    return out_flat.reshape(b, n_a, a_dim)


# --------------------------- pure-JAX reference -----------------------------
def reference(text, audio, w_qk_t, w_v_t, w_o_t, b_o):
    b, n_a, _ = audio.shape
    _, n_t, _ = text.shape
    qk = jnp.einsum('bnd,df->bnf', audio, w_qk_t)                 # (B, N_a, h*d)
    v = jnp.einsum('bnd,df->bnf', text, w_v_t)                    # (B, N_t, h*d)
    qk = qk.reshape(b, n_a, HEADS, DIM_HEAD).transpose(0, 2, 1, 3)
    v = v.reshape(b, n_t, HEADS, DIM_HEAD).transpose(0, 2, 1, 3)
    sim = jnp.einsum('bhid,bhjd->bhij', qk, v) * SCALE
    attn = jax.nn.softmax(sim, axis=-1)
    out = jnp.einsum('bhij,bhjd->bhid', attn, v)
    out = out.transpose(0, 2, 1, 3).reshape(b, n_a, INNER)
    return jnp.einsum('bnf,fd->bnd', out, w_o_t) + b_o[0]


# ------------------------------- main ---------------------------------------
if __name__ == "__main__":
    key = jax.random.PRNGKey(0)
    k_text, k_audio, k_wqk, k_wv, k_wo, k_bo = jax.random.split(key, 6)

    text = jax.random.normal(k_text, (B, N_TEXT, TEXT_DIM), dtype=jnp.float32)
    audio = jax.random.normal(k_audio, (B, N_AUDIO, AUDIO_DIM), dtype=jnp.float32)

    # Linear weights stored pre-transposed: (in, out) layout.
    w_qk_t = jax.random.normal(k_wqk, (AUDIO_DIM, INNER), dtype=jnp.float32) * 0.05
    w_v_t = jax.random.normal(k_wv, (TEXT_DIM, INNER), dtype=jnp.float32) * 0.05
    w_o_t = jax.random.normal(k_wo, (INNER, AUDIO_DIM), dtype=jnp.float32) * 0.05
    b_o = jax.random.normal(k_bo, (1, AUDIO_DIM), dtype=jnp.float32) * 0.05

    out = bidirectional_cross_attention(text, audio, w_qk_t, w_v_t, w_o_t, b_o)
    out = jax.block_until_ready(out)

    ref = reference(text, audio, w_qk_t, w_v_t, w_o_t, b_o)
    assert out.shape == (B, N_AUDIO, AUDIO_DIM)
    # Tolerance accounts for bf16 MXU operands + approx reciprocal; f32 reference.
    assert jnp.allclose(out, ref, atol=2e-2, rtol=2e-2), \
        f"max abs err {jnp.max(jnp.abs(out - ref))}"

    print("KERNEL_OK")
</pallas_src>

<mosaic_0001>
module attributes {stable_mosaic.version = 11 : i64} {
  func.func @_bi_xattn_kernel(%arg0: memref<16x32xf32, #tpu.memory_space<vmem>>, %arg1: memref<16x32xf32, #tpu.memory_space<vmem>>, %arg2: memref<32x128xf32, #tpu.memory_space<vmem>>, %arg3: memref<32x128xf32, #tpu.memory_space<vmem>>, %arg4: memref<128x32xf32, #tpu.memory_space<vmem>>, %arg5: memref<1x32xf32, #tpu.memory_space<vmem>>, %arg6: memref<16x32xf32, #tpu.memory_space<vmem>>, %arg7: memref<16x128xbf16, #tpu.memory_space<vmem>>, %arg8: memref<16x128xbf16, #tpu.memory_space<vmem>>, %arg9: memref<16x128xf32, #tpu.memory_space<vmem>>) attributes {dimension_semantics = [], scalar_prefetch = 0 : i64, scratch_operands = 3 : i64, tpu.core_type = #tpu.core_type<tc>} {
    %c0 = arith.constant 0 : index
    %c0_0 = arith.constant 0 : index
    %0 = vector.load %arg1[%c0, %c0_0] : memref<16x32xf32, #tpu.memory_space<vmem>>, vector<16x32xf32>
    %1 = arith.truncf %0 : vector<16x32xf32> to vector<16x32xbf16>
    %c0_1 = arith.constant 0 : index
    %c0_2 = arith.constant 0 : index
    %2 = vector.load %arg0[%c0_1, %c0_2] : memref<16x32xf32, #tpu.memory_space<vmem>>, vector<16x32xf32>
    %3 = arith.truncf %2 : vector<16x32xf32> to vector<16x32xbf16>
    %c0_3 = arith.constant 0 : index
    %c0_4 = arith.constant 0 : index
    %4 = vector.load %arg2[%c0_3, %c0_4] : memref<32x128xf32, #tpu.memory_space<vmem>>, vector<32x128xf32>
    %5 = arith.truncf %4 : vector<32x128xf32> to vector<32x128xbf16>
    %c0_5 = arith.constant 0 : index
    %c0_6 = arith.constant 0 : index
    %6 = vector.load %arg3[%c0_5, %c0_6] : memref<32x128xf32, #tpu.memory_space<vmem>>, vector<32x128xf32>
    %7 = arith.truncf %6 : vector<32x128xf32> to vector<32x128xbf16>
    %c0_7 = arith.constant 0 : index
    %c0_8 = arith.constant 0 : index
    %8 = vector.load %arg4[%c0_7, %c0_8] : memref<128x32xf32, #tpu.memory_space<vmem>>, vector<128x32xf32>
    %9 = arith.truncf %8 : vector<128x32xf32> to vector<128x32xbf16>
    %cst = arith.constant dense<0.000000e+00> : vector<16x128xf32>
    %10 = tpu.matmul %1, %5, %cst {dimension_numbers = #tpu.dot_dimension_numbers<[1], [0], [0], [1], [0, 0, 1, 1], [], []>} : vector<16x32xbf16>, vector<32x128xbf16>, vector<16x128xf32> -> vector<16x128xf32>
    %cst_9 = arith.constant dense<0.000000e+00> : vector<16x128xf32>
    %11 = tpu.matmul %3, %7, %cst_9 {dimension_numbers = #tpu.dot_dimension_numbers<[1], [0], [0], [1], [0, 0, 1, 1], [], []>} : vector<16x32xbf16>, vector<32x128xbf16>, vector<16x128xf32> -> vector<16x128xf32>
    %12 = arith.truncf %10 : vector<16x128xf32> to vector<16x128xbf16>
    %c0_10 = arith.constant 0 : index
    %c0_11 = arith.constant 0 : index
    %13 = vector.load %arg7[%c0_10, %c0_11] : memref<16x128xbf16, #tpu.memory_space<vmem>>, vector<16x128xbf16>
    tpu.vector_store %arg7[%c0_10, %c0_11], %12 {strides = array<i32>} : memref<16x128xbf16, #tpu.memory_space<vmem>>, vector<16x128xbf16>,
    %14 = arith.truncf %11 : vector<16x128xf32> to vector<16x128xbf16>
    %c0_12 = arith.constant 0 : index
    %c0_13 = arith.constant 0 : index
    %15 = vector.load %arg8[%c0_12, %c0_13] : memref<16x128xbf16, #tpu.memory_space<vmem>>, vector<16x128xbf16>
    tpu.vector_store %arg8[%c0_12, %c0_13], %14 {strides = array<i32>} : memref<16x128xbf16, #tpu.memory_space<vmem>>, vector<16x128xbf16>,
    %c0_14 = arith.constant 0 : index
    %c0_15 = arith.constant 0 : index
    %16 = vector.load %arg7[%c0_14, %c0_15] : memref<16x128xbf16, #tpu.memory_space<vmem>>, vector<16x32xbf16>
    %17 = vector.shape_cast %16 : vector<16x32xbf16> to vector<2x8x32xbf16>
    %c0_16 = arith.constant 0 : index
    %c0_17 = arith.constant 0 : index
    %18 = vector.load %arg8[%c0_16, %c0_17] : memref<16x128xbf16, #tpu.memory_space<vmem>>, vector<16x32xbf16>
    %19 = vector.shape_cast %18 : vector<16x32xbf16> to vector<2x8x32xbf16>
    "tpu.trace_start"() <{level = 10 : i32, message = "bid,bjd->bij"}> : () -> ()
    %cst_18 = arith.constant dense<0.000000e+00> : vector<2x8x8xf32>
    %20 = tpu.matmul %17, %19, %cst_18 {dimension_numbers = #tpu.dot_dimension_numbers<[2], [2], [1], [1], [0, 0, 0, 1, 1, 1], [0], [0]>} : vector<2x8x32xbf16>, vector<2x8x32xbf16>, vector<2x8x8xf32> -> vector<2x8x8xf32>
    "tpu.trace_stop"() : () -> ()
    %c0_19 = arith.constant 0 : index
    %c32 = arith.constant 32 : index
    %21 = vector.load %arg7[%c0_19, %c32] : memref<16x128xbf16, #tpu.memory_space<vmem>>, vector<16x32xbf16>
    %22 = vector.shape_cast %21 : vector<16x32xbf16> to vector<2x8x32xbf16>
    %c0_20 = arith.constant 0 : index
    %c32_21 = arith.constant 32 : index
    %23 = vector.load %arg8[%c0_20, %c32_21] : memref<16x128xbf16, #tpu.memory_space<vmem>>, vector<16x32xbf16>
    %24 = vector.shape_cast %23 : vector<16x32xbf16> to vector<2x8x32xbf16>
    "tpu.trace_start"() <{level = 10 : i32, message = "bid,bjd->bij"}> : () -> ()
    %cst_22 = arith.constant dense<0.000000e+00> : vector<2x8x8xf32>
    %25 = tpu.matmul %22, %24, %cst_22 {dimension_numbers = #tpu.dot_dimension_numbers<[2], [2], [1], [1], [0, 0, 0, 1, 1, 1], [0], [0]>} : vector<2x8x32xbf16>, vector<2x8x32xbf16>, vector<2x8x8xf32> -> vector<2x8x8xf32>
    "tpu.trace_stop"() : () -> ()
    %c0_23 = arith.constant 0 : index
    %c64 = arith.constant 64 : index
    %26 = vector.load %arg7[%c0_23, %c64] : memref<16x128xbf16, #tpu.memory_space<vmem>>, vector<16x32xbf16>
    %27 = vector.shape_cast %26 : vector<16x32xbf16> to vector<2x8x32xbf16>
    %c0_24 = arith.constant 0 : index
    %c64_25 = arith.constant 64 : index
    %28 = vector.load %arg8[%c0_24, %c64_25] : memref<16x128xbf16, #tpu.memory_space<vmem>>, vector<16x32xbf16>
    %29 = vector.shape_cast %28 : vector<16x32xbf16> to vector<2x8x32xbf16>
    "tpu.trace_start"() <{level = 10 : i32, message = "bid,bjd->bij"}> : () -> ()
    %cst_26 = arith.constant dense<0.000000e+00> : vector<2x8x8xf32>
    %30 = tpu.matmul %27, %29, %cst_26 {dimension_numbers = #tpu.dot_dimension_numbers<[2], [2], [1], [1], [0, 0, 0, 1, 1, 1], [0], [0]>} : vector<2x8x32xbf16>, vector<2x8x32xbf16>, vector<2x8x8xf32> -> vector<2x8x8xf32>
    "tpu.trace_stop"() : () -> ()
    %c0_27 = arith.constant 0 : index
    %c96 = arith.constant 96 : index
    %31 = vector.load %arg7[%c0_27, %c96] : memref<16x128xbf16, #tpu.memory_space<vmem>>, vector<16x32xbf16>
    %32 = vector.shape_cast %31 : vector<16x32xbf16> to vector<2x8x32xbf16>
    %c0_28 = arith.constant 0 : index
    %c96_29 = arith.constant 96 : index
    %33 = vector.load %arg8[%c0_28, %c96_29] : memref<16x128xbf16, #tpu.memory_space<vmem>>, vector<16x32xbf16>
    %34 = vector.shape_cast %33 : vector<16x32xbf16> to vector<2x8x32xbf16>
    "tpu.trace_start"() <{level = 10 : i32, message = "bid,bjd->bij"}> : () -> ()
    %cst_30 = arith.constant dense<0.000000e+00> : vector<2x8x8xf32>
    %35 = tpu.matmul %32, %34, %cst_30 {dimension_numbers = #tpu.dot_dimension_numbers<[2], [2], [1], [1], [0, 0, 0, 1, 1, 1], [0], [0]>} : vector<2x8x32xbf16>, vector<2x8x32xbf16>, vector<2x8x8xf32> -> vector<2x8x8xf32>
    "tpu.trace_stop"() : () -> ()
    %36 = tpu.concatenate %20, %25, %30, %35 in 0 : vector<2x8x8xf32>, vector<2x8x8xf32>, vector<2x8x8xf32>, vector<2x8x8xf32> -> vector<8x8x8xf32>
    %cst_31 = arith.constant 0.176776692 : f32
    %37 = vector.broadcast %cst_31 : f32 to vector<8x8x8xf32>
    %38 = arith.mulf %36, %37 : vector<8x8x8xf32>
    %cst_32 = arith.constant dense<0xFF800000> : vector<8x8xf32>
    %39 = vector.multi_reduction <maximumf>, %38, %cst_32 [2] : vector<8x8x8xf32> to vector<8x8xf32>
    %40 = vector.shape_cast %39 : vector<8x8xf32> to vector<8x8x1xf32>
    %41 = vector.broadcast %40 : vector<8x8x1xf32> to vector<8x8x8xf32>
    %42 = arith.subf %38, %41 : vector<8x8x8xf32>
    %43 = math.exp %42 : vector<8x8x8xf32>
    %cst_33 = arith.constant dense<0.000000e+00> : vector<8x8xf32>
    %44 = vector.multi_reduction <add>, %43, %cst_33 [2] : vector<8x8x8xf32> to vector<8x8xf32>
    %45 = vector.shape_cast %44 : vector<8x8xf32> to vector<8x8x1xf32>
    %46 = tpu.reciprocal %45 {approx = true} : vector<8x8x1xf32> -> vector<8x8x1xf32>
    %47 = vector.broadcast %46 : vector<8x8x1xf32> to vector<8x8x8xf32>
    %48 = arith.mulf %43, %47 : vector<8x8x8xf32>
    %49 = arith.truncf %48 : vector<8x8x8xf32> to vector<8x8x8xbf16>
    %50 = vector.extract_strided_slice %49 {offsets = [0, 0, 0], sizes = [2, 8, 8], strides = [1, 1, 1]} : vector<8x8x8xbf16> to vector<2x8x8xbf16>
    "tpu.trace_start"() <{level = 10 : i32, message = "bij,bjd->bid"}> : () -> ()
    %cst_34 = arith.constant dense<0.000000e+00> : vector<2x8x32xf32>
    %51 = tpu.matmul %50, %19, %cst_34 {dimension_numbers = #tpu.dot_dimension_numbers<[2], [1], [1], [2], [0, 0, 0, 1, 1, 2], [0], [0]>} : vector<2x8x8xbf16>, vector<2x8x32xbf16>, vector<2x8x32xf32> -> vector<2x8x32xf32>
    "tpu.trace_stop"() : () -> ()
    %52 = vector.shape_cast %51 : vector<2x8x32xf32> to vector<16x32xf32>
    %c0_35 = arith.constant 0 : index
    %c0_36 = arith.constant 0 : index
    %53 = vector.load %arg9[%c0_35, %c0_36] : memref<16x128xf32, #tpu.memory_space<vmem>>, vector<16x32xf32>
    tpu.vector_store %arg9[%c0_35, %c0_36], %52 {strides = array<i32>} : memref<16x128xf32, #tpu.memory_space<vmem>>, vector<16x32xf32>,
    %54 = vector.extract_strided_slice %49 {offsets = [2, 0, 0], sizes = [2, 8, 8], strides = [1, 1, 1]} : vector<8x8x8xbf16> to vector<2x8x8xbf16>
    "tpu.trace_start"() <{level = 10 : i32, message = "bij,bjd->bid"}> : () -> ()
    %cst_37 = arith.constant dense<0.000000e+00> : vector<2x8x32xf32>
    %55 = tpu.matmul %54, %24, %cst_37 {dimension_numbers = #tpu.dot_dimension_numbers<[2], [1], [1], [2], [0, 0, 0, 1, 1, 2], [0], [0]>} : vector<2x8x8xbf16>, vector<2x8x32xbf16>, vector<2x8x32xf32> -> vector<2x8x32xf32>
    "tpu.trace_stop"() : () -> ()
    %56 = vector.shape_cast %55 : vector<2x8x32xf32> to vector<16x32xf32>
    %c0_38 = arith.constant 0 : index
    %c32_39 = arith.constant 32 : index
    %57 = vector.load %arg9[%c0_38, %c32_39] : memref<16x128xf32, #tpu.memory_space<vmem>>, vector<16x32xf32>
    tpu.vector_store %arg9[%c0_38, %c32_39], %56 {strides = array<i32>} : memref<16x128xf32, #tpu.memory_space<vmem>>, vector<16x32xf32>,
    %58 = vector.extract_strided_slice %49 {offsets = [4, 0, 0], sizes = [2, 8, 8], strides = [1, 1, 1]} : vector<8x8x8xbf16> to vector<2x8x8xbf16>
    "tpu.trace_start"() <{level = 10 : i32, message = "bij,bjd->bid"}> : () -> ()
    %cst_40 = arith.constant dense<0.000000e+00> : vector<2x8x32xf32>
    %59 = tpu.matmul %58, %29, %cst_40 {dimension_numbers = #tpu.dot_dimension_numbers<[2], [1], [1], [2], [0, 0, 0, 1, 1, 2], [0], [0]>} : vector<2x8x8xbf16>, vector<2x8x32xbf16>, vector<2x8x32xf32> -> vector<2x8x32xf32>
    "tpu.trace_stop"() : () -> ()
    %60 = vector.shape_cast %59 : vector<2x8x32xf32> to vector<16x32xf32>
    %c0_41 = arith.constant 0 : index
    %c64_42 = arith.constant 64 : index
    %61 = vector.load %arg9[%c0_41, %c64_42] : memref<16x128xf32, #tpu.memory_space<vmem>>, vector<16x32xf32>
    tpu.vector_store %arg9[%c0_41, %c64_42], %60 {strides = array<i32>} : memref<16x128xf32, #tpu.memory_space<vmem>>, vector<16x32xf32>,
    %62 = vector.extract_strided_slice %49 {offsets = [6, 0, 0], sizes = [2, 8, 8], strides = [1, 1, 1]} : vector<8x8x8xbf16> to vector<2x8x8xbf16>
    "tpu.trace_start"() <{level = 10 : i32, message = "bij,bjd->bid"}> : () -> ()
    %cst_43 = arith.constant dense<0.000000e+00> : vector<2x8x32xf32>
    %63 = tpu.matmul %62, %34, %cst_43 {dimension_numbers = #tpu.dot_dimension_numbers<[2], [1], [1], [2], [0, 0, 0, 1, 1, 2], [0], [0]>} : vector<2x8x8xbf16>, vector<2x8x32xbf16>, vector<2x8x32xf32> -> vector<2x8x32xf32>
    "tpu.trace_stop"() : () -> ()
    %64 = vector.shape_cast %63 : vector<2x8x32xf32> to vector<16x32xf32>
    %c0_44 = arith.constant 0 : index
    %c96_45 = arith.constant 96 : index
    %65 = vector.load %arg9[%c0_44, %c96_45] : memref<16x128xf32, #tpu.memory_space<vmem>>, vector<16x32xf32>
    tpu.vector_store %arg9[%c0_44, %c96_45], %64 {strides = array<i32>} : memref<16x128xf32, #tpu.memory_space<vmem>>, vector<16x32xf32>,
    %c0_46 = arith.constant 0 : index
    %c0_47 = arith.constant 0 : index
    %66 = vector.load %arg9[%c0_46, %c0_47] : memref<16x128xf32, #tpu.memory_space<vmem>>, vector<16x128xf32>
    %67 = arith.truncf %66 : vector<16x128xf32> to vector<16x128xbf16>
    %cst_48 = arith.constant dense<0.000000e+00> : vector<16x32xf32>
    %68 = tpu.matmul %67, %9, %cst_48 {dimension_numbers = #tpu.dot_dimension_numbers<[1], [0], [0], [1], [0, 0, 1, 1], [], []>} : vector<16x128xbf16>, vector<128x32xbf16>, vector<16x32xf32> -> vector<16x32xf32>
    %c0_49 = arith.constant 0 : index
    %c0_50 = arith.constant 0 : index
    %69 = vector.load %arg5[%c0_49, %c0_50] : memref<1x32xf32, #tpu.memory_space<vmem>>, vector<1x32xf32>
    %70 = vector.broadcast %69 : vector<1x32xf32> to vector<16x32xf32>
    %71 = arith.addf %68, %70 : vector<16x32xf32>
    %c0_51 = arith.constant 0 : index
    %c0_52 = arith.constant 0 : index
    %72 = vector.load %arg6[%c0_51, %c0_52] : memref<16x32xf32, #tpu.memory_space<vmem>>, vector<16x32xf32>
    tpu.vector_store %arg6[%c0_51, %c0_52], %71 {strides = array<i32>} : memref<16x32xf32, #tpu.memory_space<vmem>>, vector<16x32xf32>,
    return
  }
}

</mosaic_0001>

<bundles_post_ra>
// kernel: bidirectional_cross_attention.1
= control target key start
LH: loop header
LB: loop body
LE: loop exit
PB: predicated region body
PF: predicated region fallthrough
CT: control target
= control target key end

     0   :  { %v1452_v3 = vmov 0.0   ;;  %vm1453_vm0 = vmmov 0   ;;  %s1778_s0 = inlined_call_operand.vmem [shape: f32[16,32], index: 0, kind: input, shape index: {}]   ;;  %s1779_s1 = inlined_call_operand.vmem [shape: f32[16,32], index: 1, kind: input, shape index: {}]   ;;  %s1780_s2 = inlined_call_operand.vmem [shape: f32[32,128], index: 2, kind: input, shape index: {}]   ;;  %s1781_s3 = inlined_call_operand.vmem [shape: f32[32,128], index: 3, kind: input, shape index: {}]   ;;  %s1782_s4 = inlined_call_operand.vmem [shape: f32[128,32], index: 4, kind: input, shape index: {}]   ;;  %s1783_s5 = inlined_call_operand.vmem [shape: f32[1,32], index: 5, kind: input, shape index: {}]   ;;  %s1784_s6 = inlined_call_operand.hbm [shape: f32[16,32], index: 6, kind: output, shape index: {}]  }
   0x1   :  { %v31_v0 = vld [vmem:[%s1780_s2] sm:$0xff]  ;;  %v32_v1 = vld [vmem:[%s1780_s2 + $0x8] sm:$0xff]  ;;  %v33_v2 = vld [vmem:[%s1780_s2 + $0x10] sm:$0xff]  ;;  %1256 = vmatprep.subr.bf16.mxu1 %v1452_v3  ;;  %1260 = vmatprep.mubr.msk.bf16.mxu1 %vm1453_vm0, %v1452_v3 }
   0x2   :  { %v35_v4 = vpack.c.bf16 %v32_v1, %v31_v0  ;;  %v34_v5 = vld [vmem:[%s1780_s2 + $0x18] sm:$0xff]  ;;  %1284 = vmatprep.subr.bf16.mxu0 %v1452_v3  ;;  %1286 = vmatprep.mubr.msk.bf16.mxu0 %vm1453_vm0, %v1452_v3  ;;  %v25_v7 = vld [vmem:[%s1779_s1] sm:$0xff]  ;;  %v26_v8 = vld [vmem:[%s1779_s1 + $0x8] sm:$0xff] }
   0x3   :  { %v36_v6 = vpack.c.bf16 %v34_v5, %v33_v2  ;;  %v37_v9 = vld [vmem:[%s1781_s3] sm:$0xff]  ;;  %v38_v10 = vld [vmem:[%s1781_s3 + $0x8] sm:$0xff] }
   0x4   :  { %1257 = vmatpush3.bf16.msra.mxu1 %v35_v4 }
   0x5   :  { %1258 = vmatprep.subr.bf16.mxu1 %v1452_v3 }
   0x6   :  { %11 = vsyncpa [#allocation6], 0  ;;  %v27_v11 = vpack.c.bf16 %v26_v8, %v25_v7  ;;  %vm67_vm1 = vcmask 261120   ;;  %v41_v12 = vpack.c.bf16 %v38_v10, %v37_v9  ;;  %v39_v13 = vld [vmem:[%s1781_s3 + $0x10] sm:$0xff]  ;;  %v40_v14 = vld [vmem:[%s1781_s3 + $0x18] sm:$0xff]  ;;  %s1454_s3 = smov 96  }
   0x7   :  { %v42_v15 = vpack.c.bf16 %v40_v14, %v39_v13  ;;  %v28_v16 = vld [vmem:[%s1778_s0] sm:$0xff]  ;;  %v29_v17 = vld [vmem:[%s1778_s0 + $0x8] sm:$0xff]  ;;  %s1455_s0 = smov 64   ;;  %s1456_s19 = smov 32   ;;  %vm708_vm2 = vcmask 1043456   ;;  %vm608_vm3 = vcmask 64512  }
   0x8   :  { %1259 = vmatpush3.bf16.msra.mxu1 %v36_v6  ;;  %v30_v18 = vpack.c.bf16 %v29_v17, %v28_v16  ;;  %vm896_vm4 = vcmask 523520   ;;  %vm997_vm5 = vcmask 785920   ;;  %vm1098_vm6 = vcmask 1048320  }
   0x9   :  { %1264 = vmatprep.subr.bf16.mxu1 %v1452_v3 }
   0xb   :  { %1261 = vmatmul.mubr.msk.bf16.vlgmr.msra.gmra.mrb[0].mxu1 %vm67_vm1, %v27_v11 }
   0xc   :  { %1265 = vmatpush3.bf16.msra.mxu1 %v41_v12  ;;  %1268 = vmatprep.mubr.msk.bf16.mxu1 %vm1453_vm0, %v1452_v3 }
   0xd   :  { %1266 = vmatprep.subr.bf16.mxu1 %v1452_v3 }
  0x10   :  { %1267 = vmatpush3.bf16.msra.mxu1 %v42_v15 }
  0x11   :  { %1272 = vmatprep.subr.bf16.mxu1 %v1452_v3 }
  0x13   :  { %1269 = vmatmul.mubr.msk.bf16.vlgmr.msra.gmra.mrb[4].mxu1 %vm67_vm1, %v30_v18 }
  0x14   :  { %1274 = vmatprep.mubr.msk.bf16.mxu1 %vm1453_vm0, %v1452_v3 }
  0xde   :  { %v105_v19 = vpop.f32.mrb[0].mxu1 }
  0xdf   :  { %v1205_v20 = vpack.c.bf16 %v105_v19, %v105_v19  ;;  %v1262_v21 = vpop.f32.mrb[1].mxu1 }
  0xe0   :  { %v108_v22 = vpop.f32.mrb[2].mxu1 }
  0xe1   :  { %273 = vrot.lane.b32.xlu1 %v1205_v20, %s1454_s3  ;;  %v1263_v23 = vpop.f32.mrb[3].mxu1  ;;  %v1206_v24 = vpack.c.bf16 %v108_v22, %v108_v22 }
  0xe5   :  { %325 = vrot.lane.b32.xlu1 %v1206_v24, %s1454_s3 }
  0xe6   :  { %v149_v25 = vpop.f32.mrb[4].mxu1 }
  0xe7   :  { %v1549_v26 = vpack.c.bf16 %v149_v25, %v149_v25  ;;  %v1270_v27 = vpop.f32.mrb[5].mxu1 }
  0xe8   :  { %v152_v28 = vpop.f32.mrb[6].mxu1 }
  0xe9   :  { %v1551_v29 = vpack.c.bf16 %v152_v28, %v152_v28  ;;  %276 = vrot.lane.b32.xlu0 %v1549_v26, %s1454_s3  ;;  %v1271_v30 = vpop.f32.mrb[7].mxu1  ;;  %v176_v31 = vsel %vm67_vm1, %v1549_v26, 0  ;;  %v709_v50 = vsel %vm708_vm2, %v1549_v26, 0 }
  0xea   :  { %1273 = vmatpush3.bf16.xpose.msra.mxu1 %v176_v31 }
  0xeb   :  { %440 = vrot.lane.b32.xlu1 %v1551_v29, %s1455_s0  ;;  %1278 = vmatprep.subr.bf16.mxu1 %v1452_v3  ;;  %v222_v32 = vsel %vm67_vm1, %v1551_v29, 0  ;;  %v754_v52 = vsel %vm708_vm2, %v1551_v29, 0 }
  0xed   :  { %328 = vrot.lane.b32.xlu0 %v1551_v29, %s1454_s3 }
  0xef   :  { %437 = vrot.lane.b32.xlu1 %v1206_v24, %s1455_s0 }
  0xf1   :  { %1275 = vmatmul.mubr.msk.bf16.vlgmr.msra.gmra.mrb[8].mxu1 %vm67_vm1, %v1205_v20  ;;  %388 = vrot.lane.b32.xlu0 %v1549_v26, %s1455_s0 }
  0xf2   :  { %1279 = vmatpush3.bf16.xpose.msra.mxu1 %v222_v32  ;;  %1280 = vmatprep.mubr.msk.bf16.mxu1 %vm1453_vm0, %v1452_v3 }
  0xf3   :  { %552 = vrot.lane.b32.xlu1 %v1551_v29, %s1456_s19  ;;  %1290 = vmatprep.subr.bf16.mxu1 %v1452_v3 }
  0xf5   :  { %385 = vrot.lane.b32.xlu0 %v1205_v20, %s1455_s0 }
  0xf7   :  { %549 = vrot.lane.b32.xlu1 %v1206_v24, %s1456_s19 }
  0xf9   :  { %500 = vrot.lane.b32.xlu0 %v1549_v26, %s1456_s19  ;;  %1281 = vmatmul.mubr.msk.bf16.vlgmr.msra.gmra.mrb[12].mxu1 %vm67_vm1, %v1206_v24 }
  0xfa   :  { %1292 = vmatprep.mubr.msk.bf16.mxu1 %vm1453_vm0, %v1452_v3 }
  0xfd   :  { %497 = vrot.lane.b32.xlu0 %v1205_v20, %s1456_s19 }
 0x153   :  { %v274_v33 = vpop.permute.xlu1 %273 }
 0x157   :  { %v326_v36 = vpop.permute.xlu1 %325 }
 0x15b   :  { %v1581_v34 = vpop.permute.xlu0 %276 }
 0x15c   :  { %v282_v35 = vsel %vm67_vm1, %v1581_v34, 0 }
 0x15d   :  { %1285 = vmatpush3.bf16.xpose.msra.mxu0 %v282_v35  ;;  %v1590_v39 = vpop.permute.xlu1 %440 }
 0x15e   :  { %1296 = vmatprep.subr.bf16.mxu0 %v1452_v3  ;;  %v446_v44 = vsel %vm67_vm1, %v1590_v39, 0 }
 0x15f   :  { %v1586_v37 = vpop.permute.xlu0 %328 }
 0x160   :  { %v334_v38 = vsel %vm67_vm1, %v1586_v37, 0 }
 0x161   :  { %1291 = vmatpush3.bf16.xpose.msra.mxu1 %v334_v38  ;;  %v438_v42 = vpop.permute.xlu1 %437 }
 0x162   :  { %1302 = vmatprep.subr.bf16.mxu1 %v1452_v3 }
 0x163   :  { %v1593_v40 = vpop.permute.xlu0 %388 }
 0x164   :  { %v394_v41 = vsel %vm67_vm1, %v1593_v40, 0  ;;  %1287 = vmatmul.mubr.msk.bf16.vlgmr.msra.gmra.mrb[0].mxu0 %vm67_vm1, %v274_v33 }
 0x165   :  { %1297 = vmatpush3.bf16.xpose.msra.mxu0 %v394_v41  ;;  %1298 = vmatprep.mubr.msk.bf16.mxu0 %vm1453_vm0, %v1452_v3  ;;  %v1612_v47 = vpop.permute.xlu1 %552 }
 0x166   :  { %1308 = vmatprep.subr.bf16.mxu0 %v1452_v3  ;;  %v558_v48 = vsel %vm67_vm1, %v1612_v47, 0 }
 0x167   :  { %v386_v43 = vpop.permute.xlu0 %385 }
 0x168   :  { %1293 = vmatmul.mubr.msk.bf16.vlgmr.msra.gmra.mrb[16].mxu1 %vm67_vm1, %v326_v36 }
 0x169   :  { %1303 = vmatpush3.bf16.xpose.msra.mxu1 %v446_v44  ;;  %1304 = vmatprep.mubr.msk.bf16.mxu1 %vm1453_vm0, %v1452_v3  ;;  %v550_v51 = vpop.permute.xlu1 %549 }
 0x16a   :  { %1314 = vmatprep.subr.bf16.mxu1 %v1452_v3 }
 0x16b   :  { %v1607_v45 = vpop.permute.xlu0 %500 }
 0x16c   :  { %v506_v46 = vsel %vm67_vm1, %v1607_v45, 0  ;;  %1299 = vmatmul.mubr.msk.bf16.vlgmr.msra.gmra.mrb[4].mxu0 %vm67_vm1, %v386_v43 }
 0x16d   :  { %1309 = vmatpush3.bf16.xpose.msra.mxu0 %v506_v46  ;;  %1310 = vmatprep.mubr.msk.bf16.mxu0 %vm1453_vm0, %v1452_v3 }
 0x16e   :  { %1320 = vmatprep.subr.bf16.mxu0 %v1452_v3 }
 0x16f   :  { %v498_v49 = vpop.permute.xlu0 %497 }
 0x170   :  { %1305 = vmatmul.mubr.msk.bf16.vlgmr.msra.gmra.mrb[20].mxu1 %vm67_vm1, %v438_v42 }
 0x171   :  { %1315 = vmatpush3.bf16.xpose.msra.mxu1 %v558_v48  ;;  %1316 = vmatprep.mubr.msk.bf16.mxu1 %vm1453_vm0, %v1452_v3 }
 0x172   :  { %1326 = vmatprep.subr.bf16.mxu1 %v1452_v3 }
 0x174   :  { %1311 = vmatmul.mubr.msk.bf16.vlgmr.msra.gmra.mrb[8].mxu0 %vm67_vm1, %v498_v49 }
 0x175   :  { %1321 = vmatpush3.bf16.msra.mxu0 %v709_v50  ;;  %1322 = vmatprep.mubr.msk.bf16.mxu0 %vm1453_vm0, %v1452_v3 }
 0x176   :  { %1332 = vmatprep.subr.bf16.mxu0 %v1452_v3 }
 0x178   :  { %1317 = vmatmul.mubr.msk.bf16.vlgmr.msra.gmra.mrb[24].mxu1 %vm67_vm1, %v550_v51 }
 0x179   :  { %1327 = vmatpush3.bf16.msra.mxu1 %v754_v52  ;;  %1328 = vmatprep.mubr.msk.bf16.mxu1 %vm1453_vm0, %v1452_v3 }
 0x17a   :  { %1338 = vmatprep.subr.bf16.mxu1 %v1452_v3 }
 0x1c4   :  { %v212_v53 = vpop.f32.mrb[8].mxu1 }
 0x1c5   :  { %v600_v54 = vmul.f32 0.17677669, %v212_v53  ;;  %v1276_v55 = vpop.f32.mrb[9].mxu1 }
 0x1c6   :  { %v215_v56 = vpop.f32.mrb[10].mxu1 }
 0x1c7   :  { %v1277_v57 = vpop.f32.mrb[11].mxu1  ;;  %v609_v58 = vsel %vm608_vm3, %v600_v54, -inf }
 0x1c8   :  { %610 = vmax.xlane.f32.xlu0 %v609_v58 }
 0x1cc   :  { %v258_v59 = vpop.f32.mrb[12].mxu1 }
 0x1cd   :  { %v601_v60 = vmul.f32 0.17677669, %v258_v59  ;;  %v1282_v61 = vpop.f32.mrb[13].mxu1 }
 0x1ce   :  { %v261_v62 = vpop.f32.mrb[14].mxu1 }
 0x1cf   :  { %v1283_v63 = vpop.f32.mrb[15].mxu1  ;;  %v612_v0 = vsel %vm608_vm3, %v601_v60, -inf }
 0x1d0   :  { %613 = vmax.xlane.f32.xlu1 %v612_v0 }
 0x237   :  { %v318_v1 = vpop.f32.mrb[0].mxu0 }
 0x238   :  { %v602_v2 = vmul.f32 0.17677669, %v318_v1  ;;  %v1288_v4 = vpop.f32.mrb[1].mxu0 }
 0x239   :  { %v321_v5 = vpop.f32.mrb[2].mxu0 }
 0x23a   :  { %v1289_v6 = vpop.f32.mrb[3].mxu0  ;;  %v615_v7 = vsel %vm608_vm3, %v602_v2, -inf }
 0x23b   :  { %616 = vmax.xlane.f32.xlu0 %v615_v7  ;;  %v370_v8 = vpop.f32.mrb[16].mxu1 }
 0x23c   :  { %v603_v9 = vmul.f32 0.17677669, %v370_v8  ;;  %v1294_v10 = vpop.f32.mrb[17].mxu1 }
 0x23d   :  { %v373_v11 = vpop.f32.mrb[18].mxu1 }
 0x23e   :  { %v1295_v12 = vpop.f32.mrb[19].mxu1  ;;  %v618_v13 = vsel %vm608_vm3, %v603_v9, -inf }
 0x23f   :  { %v430_v14 = vpop.f32.mrb[4].mxu0  ;;  %619 = vmax.xlane.f32.xlu0 %v618_v13 }
 0x240   :  { %v604_v15 = vmul.f32 0.17677669, %v430_v14  ;;  %v1300_v16 = vpop.f32.mrb[5].mxu0 }
 0x241   :  { %v433_v17 = vpop.f32.mrb[6].mxu0 }
 0x242   :  { %v1301_v18 = vpop.f32.mrb[7].mxu0  ;;  %v621_v19 = vsel %vm608_vm3, %v604_v15, -inf }
 0x243   :  { %622 = vmax.xlane.f32.xlu1 %v621_v19  ;;  %v482_v20 = vpop.f32.mrb[20].mxu1 }
 0x244   :  { %v605_v21 = vmul.f32 0.17677669, %v482_v20  ;;  %v1306_v22 = vpop.f32.mrb[21].mxu1 }
 0x245   :  { %v485_v23 = vpop.f32.mrb[22].mxu1 }
 0x246   :  { %v1307_v24 = vpop.f32.mrb[23].mxu1  ;;  %v624_v25 = vsel %vm608_vm3, %v605_v21, -inf }
 0x247   :  { %v542_v26 = vpop.f32.mrb[8].mxu0  ;;  %625 = vmax.xlane.f32.xlu0 %v624_v25 }
 0x248   :  { %v606_v27 = vmul.f32 0.17677669, %v542_v26  ;;  %v1312_v28 = vpop.f32.mrb[9].mxu0  ;;  %v801_v26 = vsel %vm708_vm2, %v1581_v34, 0 }
 0x249   :  { %v545_v29 = vpop.f32.mrb[10].mxu0 }
 0x24a   :  { %v1313_v30 = vpop.f32.mrb[11].mxu0  ;;  %v627_v31 = vsel %vm608_vm3, %v606_v27, -inf }
 0x24b   :  { %628 = vmax.xlane.f32.xlu1 %v627_v31  ;;  %v594_v32 = vpop.f32.mrb[24].mxu1  ;;  %v846_v30 = vsel %vm708_vm2, %v1586_v37, 0 }
 0x24c   :  { %v607_v33 = vmul.f32 0.17677669, %v594_v32  ;;  %v1318_v35 = vpop.f32.mrb[25].mxu1 }
 0x24d   :  { %v597_v36 = vpop.f32.mrb[26].mxu1 }
 0x24e   :  { %v1319_v38 = vpop.f32.mrb[27].mxu1  ;;  %v630_v41 = vsel %vm608_vm3, %v607_v33, -inf }
 0x24f   :  { %631 = vmax.xlane.f32.xlu0 %v630_v41  ;;  %v902_v41 = vsel %vm708_vm2, %v1593_v40, 0 }
 0x255   :  { %v611_v42 = vpop.xlane.xlu0 %610 }
 0x256   :  { %v633_v43 = vsub.f32 %v600_v54, %v611_v42 }
 0x258   :  { %v641_v44 = vmul.f32 1.442695, %v633_v43 }
 0x25a   :  { %1396 = vpow2.f32 %v641_v44 }
 0x25d   :  { %v614_v46 = vpop.xlane.xlu1 %613 }
 0x25e   :  { %v634_v48 = vsub.f32 %v601_v60, %v614_v46 }
 0x260   :  { %v643_v49 = vmul.f32 1.442695, %v634_v48  ;;  %v947_v48 = vsel %vm708_vm2, %v1590_v39, 0 }
 0x262   :  { %1398 = vpow2.f32 %v643_v49 }
 0x264   :  { %v1397_v50 = vpop.eup %1396 }
 0x265   :  { %v657_v51 = vsel %vm608_vm3, %v1397_v50, 0.0 }
 0x266   :  { %658 = vadd.xlane.f32.xlu1 %v657_v51 }
 0x26c   :  { %v1399_v52 = vpop.eup %1398 }
 0x26d   :  { %v660_v53 = vsel %vm608_vm3, %v1399_v52, 0.0 }
 0x26e   :  { %661 = vadd.xlane.f32.xlu0 %v660_v53 }
 0x2c8   :  { %v617_v55 = vpop.xlane.xlu0 %616 }
 0x2c9   :  { %v635_v56 = vsub.f32 %v602_v2, %v617_v55 }
 0x2cb   :  { %v645_v57 = vmul.f32 1.442695, %v635_v56  ;;  %v1048_v56 = vsel %vm708_vm2, %v1612_v47, 0 }
 0x2cc   :  { %v620_v58 = vpop.xlane.xlu0 %619 }
 0x2cd   :  { %1400 = vpow2.f32 %v645_v57  ;;  %v636_v54 = vsub.f32 %v603_v9, %v620_v58 }
 0x2cf   :  { %v647_v59 = vmul.f32 1.442695, %v636_v54 }
 0x2d0   :  { %v623_v61 = vpop.xlane.xlu1 %622 }
 0x2d1   :  { %1402 = vpow2.f32 %v647_v59  ;;  %v637_v60 = vsub.f32 %v604_v15, %v623_v61 }
 0x2d3   :  { %v649_v62 = vmul.f32 1.442695, %v637_v60 }
 0x2d4   :  { %v626_v63 = vpop.xlane.xlu0 %625 }
 0x2d5   :  { %1404 = vpow2.f32 %v649_v62  ;;  %v638_v0 = vsub.f32 %v605_v21, %v626_v63 }
 0x2d7   :  { %v1401_v1 = vpop.eup %1400  ;;  %v651_v4 = vmul.f32 1.442695, %v638_v0 }
 0x2d8   :  { %v629_v5 = vpop.xlane.xlu1 %628  ;;  %v663_v6 = vsel %vm608_vm3, %v1401_v1, 0.0 }
 0x2d9   :  { %1406 = vpow2.f32 %v651_v4  ;;  %v639_v7 = vsub.f32 %v606_v27, %v629_v5  ;;  %664 = vadd.xlane.f32.xlu1 %v663_v6  ;;  %v43_v4 = vld [vmem:[%s1782_s4] sm:$0xff]  ;;  %v44_v5 = vld [vmem:[%s1782_s4 + $0x8] sm:$0xff] }
 0x2db   :  { %v1403_v2 = vpop.eup %1402  ;;  %v653_v8 = vmul.f32 1.442695, %v639_v7  ;;  %v59_v7 = vpack.c.bf16 %v44_v5, %v43_v4 }
 0x2dc   :  { %v632_v10 = vpop.xlane.xlu0 %631  ;;  %v666_v9 = vsel %vm608_vm3, %v1403_v2, 0.0 }
 0x2dd   :  { %1408 = vpow2.f32 %v653_v8  ;;  %v640_v11 = vsub.f32 %v607_v33, %v632_v10  ;;  %667 = vadd.xlane.f32.xlu0 %v666_v9  ;;  %v46_v8 = vld [vmem:[%s1782_s4 + $0x18] sm:$0xff]  ;;  %v47_v9 = vld [vmem:[%s1782_s4 + $0x20] sm:$0xff] }
 0x2df   :  { %v1405_v12 = vpop.eup %1404  ;;  %v655_v13 = vmul.f32 1.442695, %v640_v11  ;;  %v48_v11 = vld [vmem:[%s1782_s4 + $0x28] sm:$0xff] }
 0x2e0   :  { %v669_v14 = vsel %vm608_vm3, %v1405_v12, 0.0 }
 0x2e1   :  { %1410 = vpow2.f32 %v655_v13  ;;  %670 = vadd.xlane.f32.xlu1 %v669_v14  ;;  %v49_v13 = vld [vmem:[%s1782_s4 + $0x30] sm:$0xff]  ;;  %v50_v14 = vld [vmem:[%s1782_s4 + $0x38] sm:$0xff] }
 0x2e3   :  { %v1407_v15 = vpop.eup %1406 }
 0x2e4   :  { %v672_v16 = vsel %vm608_vm3, %v1407_v15, 0.0 }
 0x2e5   :  { %673 = vadd.xlane.f32.xlu0 %v672_v16 }
 0x2e7   :  { %v1649_v17 = vpop.eup %1408 }
 0x2e8   :  { %v675_v18 = vsel %vm608_vm3, %v1649_v17, 0.0 }
 0x2e9   :  { %676 = vadd.xlane.f32.xlu1 %v675_v18  ;;  %v52_v18 = vld [vmem:[%s1782_s4 + $0x48] sm:$0xff] }
 0x2eb   :  { %v1653_v19 = vpop.eup %1410 }
 0x2ec   :  { %v678_v20 = vsel %vm608_vm3, %v1653_v19, 0.0 }
 0x2ed   :  { %679 = vadd.xlane.f32.xlu0 %v678_v20 }
 0x2f3   :  { %v659_v21 = vpop.xlane.xlu1 %658 }
 0x2f4   :  { %1412 = vrcp.f32 %v659_v21 }
 0x2fb   :  { %v662_v22 = vpop.xlane.xlu0 %661 }
 0x2fc   :  { %1414 = vrcp.f32 %v662_v22 }
 0x2fe   :  { %v1413_v23 = vpop.eup %1412 }
 0x2ff   :  { %v689_v24 = vmul.f32 %v1413_v23, %v1397_v50 }
 0x301   :  { %v697_v25 = vpack.c.bf16 %v689_v24, %v689_v24  ;;  %v53_v24 = vld [vmem:[%s1782_s4 + $0x50] sm:$0xff] }
 0x303   :  { %1323 = vmatmul.mubr.msk.bf16.vlgmr.msra.gmra.mrb[12].mxu0 %vm608_vm3, %v697_v25  ;;  %v54_v25 = vld [vmem:[%s1782_s4 + $0x58] sm:$0xff] }
 0x304   :  { %1333 = vmatpush3.bf16.msra.mxu0 %v801_v26  ;;  %1334 = vmatprep.mubr.msk.bf16.mxu0 %vm1453_vm0, %v1452_v3 }
 0x305   :  { %1344 = vmatprep.subr.bf16.mxu0 %v1452_v3 }
 0x306   :  { %v1415_v27 = vpop.eup %1414 }
 0x307   :  { %v690_v28 = vmul.f32 %v1415_v27, %v1399_v52  ;;  %v1003_v52 = vsel %vm708_vm2, %v1607_v45, 0  ;;  %v64_v27 = vpack.c.bf16 %v54_v25, %v53_v24 }
 0x309   :  { %v698_v29 = vpack.c.bf16 %v690_v28, %v690_v28 }
 0x30b   :  { %1329 = vmatmul.mubr.msk.bf16.vlgmr.msra.gmra.mrb[28].mxu1 %vm608_vm3, %v698_v29 }
 0x30c   :  { %1339 = vmatpush3.bf16.msra.mxu1 %v846_v30  ;;  %1340 = vmatprep.mubr.msk.bf16.mxu1 %vm1453_vm0, %v1452_v3 }
 0x30d   :  { %1350 = vmatprep.subr.bf16.mxu1 %v1452_v3 }
 0x366   :  { %v665_v34 = vpop.xlane.xlu1 %664 }
 0x367   :  { %1416 = vrcp.f32 %v665_v34  ;;  %v55_v34 = vld [vmem:[%s1782_s4 + $0x60] sm:$0xff] }
 0x36a   :  { %v668_v31 = vpop.xlane.xlu0 %667 }
 0x36b   :  { %1418 = vrcp.f32 %v668_v31  ;;  %v56_v31 = vld [vmem:[%s1782_s4 + $0x68] sm:$0xff] }
 0x36e   :  { %v671_v32 = vpop.xlane.xlu1 %670 }
 0x36f   :  { %1420 = vrcp.f32 %v671_v32  ;;  %v57_v32 = vld [vmem:[%s1782_s4 + $0x70] sm:$0xff] }
 0x371   :  { %v1417_v33 = vpop.eup %1416 }
 0x372   :  { %v691_v35 = vmul.f32 %v1417_v33, %v1401_v1  ;;  %v674_v36 = vpop.xlane.xlu0 %673 }
 0x373   :  { %1422 = vrcp.f32 %v674_v36  ;;  %v58_v36 = vld [vmem:[%s1782_s4 + $0x78] sm:$0xff] }
 0x374   :  { %v699_v38 = vpack.c.bf16 %v691_v35, %v691_v35  ;;  %v65_v35 = vpack.c.bf16 %v56_v31, %v55_v34 }
 0x375   :  { %v1419_v37 = vpop.eup %1418 }
 0x376   :  { %v692_v42 = vmul.f32 %v1419_v37, %v1403_v2  ;;  %1335 = vmatmul.mubr.msk.bf16.vlgmr.msra.gmra.mrb[16].mxu0 %vm608_vm3, %v699_v38  ;;  %v677_v43 = vpop.xlane.xlu1 %676  ;;  %v45_v2 = vld [vmem:[%s1782_s4 + $0x10] sm:$0xff] }
 0x377   :  { %1345 = vmatpush3.bf16.msra.mxu0 %v902_v41  ;;  %1424 = vrcp.f32 %v677_v43  ;;  %1346 = vmatprep.mubr.msk.bf16.mxu0 %vm1453_vm0, %v1452_v3  ;;  %v60_v10 = vpack.c.bf16 %v46_v8, %v45_v2  ;;  %v66_v41 = vpack.c.bf16 %v58_v36, %v57_v32 }
 0x378   :  { %v700_v44 = vpack.c.bf16 %v692_v42, %v692_v42  ;;  %1356 = vmatprep.subr.bf16.mxu0 %v1452_v3 }
 0x379   :  { %v1421_v46 = vpop.eup %1420 }
 0x37a   :  { %v693_v49 = vmul.f32 %v1421_v46, %v1405_v12  ;;  %1341 = vmatmul.mubr.msk.bf16.vlgmr.msra.gmra.mrb[32].mxu1 %vm608_vm3, %v700_v44  ;;  %v680_v40 = vpop.xlane.xlu0 %679  ;;  %v61_v12 = vpack.c.bf16 %v48_v11, %v47_v9 }
 0x37b   :  { %1351 = vmatpush3.bf16.msra.mxu1 %v947_v48  ;;  %1426 = vrcp.f32 %v680_v40  ;;  %1352 = vmatprep.mubr.msk.bf16.mxu1 %vm1453_vm0, %v1452_v3 }
 0x37c   :  { %v701_v50 = vpack.c.bf16 %v693_v49, %v693_v49  ;;  %1362 = vmatprep.subr.bf16.mxu1 %v1452_v3 }
 0x37d   :  { %v1423_v51 = vpop.eup %1422 }
 0x37e   :  { %v694_v53 = vmul.f32 %v1423_v51, %v1407_v15  ;;  %1347 = vmatmul.mubr.msk.bf16.vlgmr.msra.gmra.mrb[20].mxu0 %vm608_vm3, %v701_v50  ;;  %v62_v15 = vpack.c.bf16 %v50_v14, %v49_v13 }
 0x37f   :  { %1357 = vmatpush3.bf16.msra.mxu0 %v1003_v52  ;;  %1358 = vmatprep.mubr.msk.bf16.mxu0 %vm1453_vm0, %v1452_v3 }
 0x380   :  { %v702_v39 = vpack.c.bf16 %v694_v53, %v694_v53  ;;  %1368 = vmatprep.subr.bf16.mxu0 %v1452_v3 }
 0x381   :  { %v1425_v55 = vpop.eup %1424 }
 0x382   :  { %v695_v57 = vmul.f32 %v1425_v55, %v1649_v17  ;;  %1353 = vmatmul.mubr.msk.bf16.vlgmr.msra.gmra.mrb[36].mxu1 %vm608_vm3, %v702_v39  ;;  %v51_v17 = vld [vmem:[%s1782_s4 + $0x40] sm:$0xff] }
 0x383   :  { %1363 = vmatpush3.bf16.msra.mxu1 %v1048_v56  ;;  %1364 = vmatprep.mubr.msk.bf16.mxu1 %vm1453_vm0, %v1452_v3  ;;  %v63_v20 = vpack.c.bf16 %v52_v18, %v51_v17 }
 0x384   :  { %v703_v45 = vpack.c.bf16 %v695_v57, %v695_v57 }
 0x385   :  { %v1427_v58 = vpop.eup %1426 }
 0x386   :  { %v696_v54 = vmul.f32 %v1427_v58, %v1653_v19  ;;  %1359 = vmatmul.mubr.msk.bf16.vlgmr.msra.gmra.mrb[24].mxu0 %vm608_vm3, %v703_v45 }
 0x387   :  { %1384 = vmatprep.mubr.msk.bf16.mxu0 %vm1453_vm0, %v1452_v3  ;;  %1369 = vmatpush3.bf16.msra.mxu0 %v59_v7 }
 0x388   :  { %v704_v59 = vpack.c.bf16 %v696_v54, %v696_v54  ;;  %1370 = vmatprep.subr.bf16.mxu0 %v1452_v3 }
 0x38a   :  { %1365 = vmatmul.mubr.msk.bf16.vlgmr.msra.gmra.mrb[40].mxu1 %vm608_vm3, %v704_v59 }
 0x38b   :  { %1371 = vmatpush3.bf16.msra.mxu0 %v60_v10 }
 0x38c   :  { %1372 = vmatprep.subr.bf16.mxu0 %v1452_v3 }
 0x38f   :  { %1373 = vmatpush3.bf16.msra.mxu0 %v61_v12 }
 0x390   :  { %1374 = vmatprep.subr.bf16.mxu0 %v1452_v3 }
 0x393   :  { %1375 = vmatpush3.bf16.msra.mxu0 %v62_v15 }
 0x394   :  { %1376 = vmatprep.subr.bf16.mxu0 %v1452_v3 }
 0x397   :  { %1377 = vmatpush3.bf16.msra.mxu0 %v63_v20 }
 0x398   :  { %1378 = vmatprep.subr.bf16.mxu0 %v1452_v3 }
 0x39b   :  { %1379 = vmatpush3.bf16.msra.mxu0 %v64_v27 }
 0x39c   :  { %1380 = vmatprep.subr.bf16.mxu0 %v1452_v3 }
 0x39f   :  { %1381 = vmatpush3.bf16.msra.mxu0 %v65_v35 }
 0x3a0   :  { %1382 = vmatprep.subr.bf16.mxu0 %v1452_v3 }
 0x3a3   :  { %1383 = vmatpush3.bf16.msra.mxu0 %v66_v41 }
 0x3d6   :  { %v745_v47 = vpop.f32.mrb[12].mxu0 }
 0x3d7   :  { %796 = vst.msk [vmem:[#allocation4] sm:$0xff] %vm67_vm1, %v745_v47  ;;  %v1324_v61 = vpop.f32.mrb[13].mxu0 }
 0x3d8   :  { %v748_v60 = vpop.f32.mrb[14].mxu0  ;;  %v1204_v61 = vld [vmem:[%s1783_s5] ss:$0 sm:$0xff] }
 0x3d9   :  { %v1325_v62 = vpop.f32.mrb[15].mxu0 }
 0x3de   :  { %v790_v63 = vpop.f32.mrb[28].mxu1 }
 0x3df   :  { %797 = vst.msk [vmem:[#allocation4 + $0x8] sm:$0xff] %vm67_vm1, %v790_v63  ;;  %v1330_v0 = vpop.f32.mrb[29].mxu1 }
 0x3e0   :  { %v793_v1 = vpop.f32.mrb[30].mxu1 }
 0x3e1   :  { %v1331_v6 = vpop.f32.mrb[31].mxu1 }
 0x449   :  { %v837_v16 = vpop.f32.mrb[16].mxu0 }
 0x44a   :  { %890 = vrot.lane.b32.xlu1 %v837_v16, %s1456_s19  ;;  %v1336_v19 = vpop.f32.mrb[17].mxu0 }
 0x44b   :  { %v840_v21 = vpop.f32.mrb[18].mxu0 }
 0x44c   :  { %v1337_v22 = vpop.f32.mrb[19].mxu0 }
 0x44d   :  { %v882_v23 = vpop.f32.mrb[32].mxu1 }
 0x44e   :  { %892 = vrot.lane.b32.xlu0 %v882_v23, %s1456_s19  ;;  %v1342_v26 = vpop.f32.mrb[33].mxu1 }
 0x44f   :  { %v885_v28 = vpop.f32.mrb[34].mxu1 }
 0x450   :  { %v1343_v29 = vpop.f32.mrb[35].mxu1 }
 0x451   :  { %v938_v30 = vpop.f32.mrb[20].mxu0 }
 0x452   :  { %991 = vrot.lane.b32.xlu1 %v938_v30, %s1455_s0  ;;  %v1348_v33 = vpop.f32.mrb[21].mxu0 }
 0x453   :  { %v941_v38 = vpop.f32.mrb[22].mxu0 }
 0x454   :  { %v1349_v37 = vpop.f32.mrb[23].mxu0 }
 0x455   :  { %v983_v42 = vpop.f32.mrb[36].mxu1 }
 0x456   :  { %993 = vrot.lane.b32.xlu1 %v983_v42, %s1455_s0  ;;  %v1354_v43 = vpop.f32.mrb[37].mxu1  ;;  %s1457_s0 = smov [#allocation5]  }
 0x457   :  { %v986_v44 = vpop.f32.mrb[38].mxu1  ;;  %s1159_s26 = sshll.u32 %s1457_s0, 4  ;;  %s1160_s26 = int_to_ptr.vmem [resolvable:$true] %s1159_s26 }
 0x458   :  { %v1355_v46 = vpop.f32.mrb[39].mxu1  ;;  %s1428_s27 = scalar_lea.vmem %s1160_s26, 256  ;;  %p1433_p1 = scmp.lt.s32.totalorder %s1160_s26, %s1160_s26 }
 0x459   :  { %v1039_v48 = vpop.f32.mrb[24].mxu0  ;;  %p1429_p0 = scmp.ne.s32.totalorder %s1160_s26, %s1428_s27  ;;  %p1434_p2 = scmp.lt.s32.totalorder %s1428_s27, %s1428_s27 }
 0x45a   :  { %v1360_v49 = vpop.f32.mrb[25].mxu0  ;;  %1092 = vrot.lane.b32.xlu0 %v1039_v48, %s1454_s3 }
 0x45b   :  { %v1042_v40 = vpop.f32.mrb[26].mxu0  ;;  %p1435_p3 = por %p1434_p2, %p1433_p1 }
 0x45c   :  { %v1361_v50 = vpop.f32.mrb[27].mxu0 }
 0x45d   :  { %v1084_v51 = vpop.f32.mrb[40].mxu1  ;;  %p1436_p4 = pnand %p1435_p3, %p1429_p0 }
 0x45e   :  { %1094 = vrot.lane.b32.xlu1 %v1084_v51, %s1454_s3  ;;  %v1366_v52 = vpop.f32.mrb[41].mxu1 }
 0x45f   :  { %v1087_v53 = vpop.f32.mrb[42].mxu1 }
 0x460   :  { %v1367_v39 = vpop.f32.mrb[43].mxu1 }
 0x4bc   :  { %v891_v3 = vpop.permute.xlu1 %890 }
 0x4bd   :  { %897 = vst.msk [vmem:[#allocation4] sm:$0xff] %vm896_vm4, %v891_v3 }
 0x4c0   :  { %v893_v55 = vpop.permute.xlu0 %892 }
 0x4c1   :  { %898 = vst.msk [vmem:[#allocation4 + $0x8] sm:$0xff] %vm896_vm4, %v893_v55 }
 0x4c4   :  { %v992_v56 = vpop.permute.xlu1 %991 }
 0x4c5   :  { %998 = vst.msk [vmem:[#allocation4] sm:$0xff] %vm997_vm5, %v992_v56 }
 0x4c8   :  { %v994_v57 = vpop.permute.xlu1 %993 }
 0x4c9   :  { %999 = vst.msk [vmem:[#allocation4 + $0x8] sm:$0xff] %vm997_vm5, %v994_v57 }
 0x4cc   :  { %v1093_v45 = vpop.permute.xlu0 %1092 }
 0x4cd   :  { %1099 = vst.msk [vmem:[#allocation4] sm:$0xff] %vm1098_vm6, %v1093_v45 }
 0x4d0   :  { %v1095_v58 = vpop.permute.xlu1 %1094 }
 0x4d1   :  { %1100 = vst.msk [vmem:[#allocation4 + $0x8] sm:$0xff] %vm1098_vm6, %v1095_v58 }
 0x4d4   :  { %v1101_v54 = vld [vmem:[#allocation4] sm:$0xff] }
 0x4d8   :  { %v1102_v59 = vld [vmem:[#allocation4 + $0x8] sm:$0xff] }
 0x4d9   :  { %v1103_v47 = vpack.c.bf16 %v1102_v59, %v1101_v54 }
 0x4db   :  { %1385 = vmatmul.mubr.bf16.vlgmr.msra.gmra.mrb[28].mxu0 %v1103_v47 }
 0x5ae   :  { %v1145_v60 = vpop.f32.mrb[28].mxu0 }
 0x5af   :  { %v1146_v62 = vadd.f32 %v1204_v61, %v1145_v60  ;;  %v1386_v63 = vpop.f32.mrb[29].mxu0 }
 0x5b0   :  { %v1148_v0 = vpop.f32.mrb[30].mxu0 }
 0x5b1   :  { %1152 = vst.msk [vmem:[#allocation5] sm:$0xff] %vm67_vm1, %v1146_v62  ;;  %v1149_v1 = vadd.f32 %v1204_v61, %v1148_v0  ;;  %v1387_v4 = vpop.f32.mrb[31].mxu0 }
 0x5b3   :  { %1153 = vst.msk [vmem:[#allocation5 + $0x8] sm:$0xff] %vm67_vm1, %v1149_v1 }
 0x5b4   :  { %1439 = shalt.err (!%p1436_p4)
}
 0x5b5   :  { %s1440_s29 = scalar_lea.hbm %s1784_s6, 256 }
 0x5b6   :  { %p1441_p5 = scmp.ne.s32.totalorder %s1784_s6, %s1440_s29  ;;  %p1444_p6 = scmp.lt.u32.totalorder %s1440_s29, %s1784_s6 }
 0x5b8   :  { %p1446_p7 = pnand %p1444_p6, %p1441_p5 }
 0x5ba   :  { %1449 = shalt.err (!%p1446_p7)
}
 0x5bb   :  { %s1458_s9 = smov 128   ;;  %s1459_s10 = smov 8  }
 0x5bc   :  { %1165 = dma.vmem_to_hbm [thread:$0]  %s1160_s26, 256, %s1784_s6, [#allocation6], %s1458_s9, %s1458_s9, %s1459_s10  }
 0x5bd   :  { %1450 = dma.done.wait [#allocation6], 256  }
 0x5be   :  { %1451 = vsyncadd [#allocation6], 4294967040 }
 0x5bf   :  { %1169 = vsyncpa [#allocation6], 1 }

</bundles_post_ra>
